<compile_context>
chip_gen: v6e
topology: v6e:2x2x1
jax: 0.10.0
libtpu: 0.0.40
codegen_flags: <defaults>
</compile_context>

<pallas_src>
import jax
import jax.numpy as jnp
from jax.experimental import pallas as pl
from jax.experimental.pallas import tpu as pltpu


def mlp_kernel(x_ref, w1_ref, b1_ref, w2_ref, b2_ref, o_ref):
    # x arrives as f32 (4 B/elem of HBM traffic); cast to bf16 on the VPU so
    # the MXU still sees bf16 operands without a separate HBM convert pass.
    x_bf16 = x_ref[...].astype(jnp.bfloat16)
    # fc1: bf16 [B, 784] @ bf16 [784, 128] -> f32 accumulate on the MXU.
    h = jnp.dot(x_bf16, w1_ref[...], preferred_element_type=jnp.float32)
    # f32 epilogue: bias broadcast [1, 128] + ReLU.
    h = jnp.maximum(h + b1_ref[...], 0.0)
    # fc2: bf16 [B, 128] @ bf16 [128, 10] -> f32; bias add in f32.
    y = jnp.dot(h.astype(jnp.bfloat16), w2_ref[...],
                preferred_element_type=jnp.float32)
    o_ref[...] = (y + b2_ref[...]).astype(o_ref.dtype)


def prepare_params(w1, b1, w2, b2):
    """One-time parameter prep.

    * reshapes 1-D biases to [1, features]
    * zero-pads the hidden dim to a multiple of 128 (lane-dense intermediate;
      padded W1 columns / W2 rows are zero, so outputs are unchanged)
    * casts both weight matrices to bf16 (MXU operands; f32 accumulation)
    """
    b1 = jnp.asarray(b1).reshape(1, -1)
    b2 = jnp.asarray(b2).reshape(1, -1)
    hidden = w1.shape[1]
    hidden_pad = ((hidden + 127) // 128) * 128
    pad = hidden_pad - hidden
    w1p = jnp.pad(w1, ((0, 0), (0, pad))).astype(jnp.bfloat16)   # [784, 128] bf16
    b1p = jnp.pad(b1, ((0, 0), (0, pad))).astype(jnp.float32)    # [1, 128]   f32
    w2p = jnp.pad(w2, ((0, pad), (0, 0))).astype(jnp.bfloat16)   # [128, 10]  bf16
    b2p = b2.astype(jnp.float32)                                 # [1, 10]    f32
    return w1p, b1p, w2p, b2p


def _cost_estimate(B, in_features, hidden_pad, num_classes, params):
    w1, b1, w2, b2 = params
    flops = 2 * B * in_features * hidden_pad + 2 * B * hidden_pad * num_classes
    weight_bytes = (w1.size * w1.dtype.itemsize + b1.size * b1.dtype.itemsize
                    + w2.size * w2.dtype.itemsize + b2.size * b2.dtype.itemsize)
    bytes_accessed = (B * in_features * 4      # x streamed as f32
                      + B * num_classes * 4    # output writeback
                      + weight_bytes)
    return pl.CostEstimate(flops=flops, transcendentals=0,
                           bytes_accessed=bytes_accessed)


def nn_forward(x, params, *, batch_tile=1024):
    """Pallas forward pass.  `params` must come from prepare_params()."""
    w1, b1, w2, b2 = params
    B, in_features = x.shape
    hidden_pad = w1.shape[1]
    num_classes = w2.shape[1]
    x = x.astype(jnp.float32)   # kernel handles the bf16 cast internally

    cost = _cost_estimate(B, in_features, hidden_pad, num_classes, params)

    if B >= 2 * batch_tile:
        # Large batch: cdiv grid (partial last block is masked by Pallas), the
        # batch axis is "parallel" so v7x megacore splits it across both TCs.
        steps = pl.cdiv(B, batch_tile)
        if steps > 1 and steps % 2 == 1:
            # Even step count keeps both v7x TensorCores busy on the last wave
            # (no-op on single-TC v5e/v6e).  Keep the tile a multiple of 8.
            steps += 1
            batch_tile = ((pl.cdiv(B, steps) + 7) // 8) * 8
            steps = pl.cdiv(B, batch_tile)
        return pl.pallas_call(
            mlp_kernel,
            out_shape=jax.ShapeDtypeStruct((B, num_classes), jnp.float32),
            grid=(steps,),
            in_specs=[
                pl.BlockSpec((batch_tile, in_features), lambda i: (i, 0)),
                pl.BlockSpec(w1.shape, lambda i: (0, 0)),
                pl.BlockSpec(b1.shape, lambda i: (0, 0)),
                pl.BlockSpec(w2.shape, lambda i: (0, 0)),
                pl.BlockSpec(b2.shape, lambda i: (0, 0)),
            ],
            out_specs=pl.BlockSpec((batch_tile, num_classes), lambda i: (i, 0)),
            compiler_params=pltpu.CompilerParams(
                dimension_semantics=("parallel",),
                vmem_limit_bytes=28 * 1024 * 1024),
            cost_estimate=cost,
        )(x, w1, b1, w2, b2)

    # Small batch: no grid -> no pipeline machinery, no double-buffering; the
    # whole problem (well under 1 MiB at batch 64) sits in VMEM.
    vmem = pl.BlockSpec(memory_space=pltpu.MemorySpace.VMEM)
    return pl.pallas_call(
        mlp_kernel,
        out_shape=jax.ShapeDtypeStruct((B, num_classes), jnp.float32),
        in_specs=[vmem, vmem, vmem, vmem, vmem],
        out_specs=vmem,
        cost_estimate=cost,
    )(x, w1, b1, w2, b2)


def reference_forward(x, w1, b1, w2, b2):
    h = jnp.maximum(x @ w1 + b1, 0.0)
    return h @ w2 + b2


if __name__ == "__main__":
    input_size = 784
    hidden = 50
    num_classes = 10
    batch = 64

    key = jax.random.PRNGKey(0)
    kx, k1, k2, k3, k4, kx2 = jax.random.split(key, 6)

    x = jax.random.normal(kx, (batch, input_size), dtype=jnp.float32)

    bound1 = 1.0 / (input_size ** 0.5)
    w1 = jax.random.uniform(k1, (input_size, hidden), jnp.float32, -bound1, bound1)
    b1 = jax.random.uniform(k2, (hidden,), jnp.float32, -bound1, bound1)

    bound2 = 1.0 / (hidden ** 0.5)
    w2 = jax.random.uniform(k3, (hidden, num_classes), jnp.float32, -bound2, bound2)
    b2 = jax.random.uniform(k4, (num_classes,), jnp.float32, -bound2, bound2)

    params = prepare_params(w1, b1, w2, b2)   # pad + cast once, not per call

    # --- small batch (module spec: 64 x 784), no-grid path ---
    out = nn_forward(x, params)
    out = jax.block_until_ready(out)
    ref = reference_forward(x, w1, b1.reshape(1, -1), w2, b2.reshape(1, -1))
    assert out.shape == (batch, num_classes)
    # bf16 MXU operands -> looser tolerance vs. the f32 reference.
    assert jnp.allclose(out, ref, atol=3e-2, rtol=3e-2), "small-batch mismatch"

    # --- large, non-tile-multiple batch: exercises the cdiv grid, the
    #     even-step adjustment and the masked partial last block ---
    big_batch = 2500
    x_big = jax.random.normal(kx2, (big_batch, input_size), dtype=jnp.float32)
    out_big = nn_forward(x_big, params)
    out_big = jax.block_until_ready(out_big)
    ref_big = reference_forward(x_big, w1, b1.reshape(1, -1), w2, b2.reshape(1, -1))
    assert out_big.shape == (big_batch, num_classes)
    assert jnp.allclose(out_big, ref_big, atol=3e-2, rtol=3e-2), "large-batch mismatch"

    print("KERNEL_OK")
</pallas_src>

<mosaic_0001>
module attributes {stable_mosaic.version = 11 : i64} {
  func.func @mlp_kernel(%arg0: memref<64x784xf32, #tpu.memory_space<vmem>>, %arg1: memref<784x128xbf16, #tpu.memory_space<vmem>>, %arg2: memref<1x128xf32, #tpu.memory_space<vmem>>, %arg3: memref<128x10xbf16, #tpu.memory_space<vmem>>, %arg4: memref<1x10xf32, #tpu.memory_space<vmem>>, %arg5: memref<64x10xf32, #tpu.memory_space<vmem>>) attributes {dimension_semantics = [], scalar_prefetch = 0 : i64, scratch_operands = 0 : i64, tpu.core_type = #tpu.core_type<tc>} {
    %c0 = arith.constant 0 : index
    %c0_0 = arith.constant 0 : index
    %0 = vector.load %arg0[%c0, %c0_0] : memref<64x784xf32, #tpu.memory_space<vmem>>, vector<64x784xf32>
    %1 = arith.truncf %0 : vector<64x784xf32> to vector<64x784xbf16>
    %c0_1 = arith.constant 0 : index
    %c0_2 = arith.constant 0 : index
    %2 = vector.load %arg1[%c0_1, %c0_2] : memref<784x128xbf16, #tpu.memory_space<vmem>>, vector<784x128xbf16>
    %cst = arith.constant dense<0.000000e+00> : vector<64x128xf32>
    %3 = tpu.matmul %1, %2, %cst {dimension_numbers = #tpu.dot_dimension_numbers<[1], [0], [0], [1], [0, 0, 1, 1], [], []>} : vector<64x784xbf16>, vector<784x128xbf16>, vector<64x128xf32> -> vector<64x128xf32>
    %c0_3 = arith.constant 0 : index
    %c0_4 = arith.constant 0 : index
    %4 = vector.load %arg2[%c0_3, %c0_4] : memref<1x128xf32, #tpu.memory_space<vmem>>, vector<1x128xf32>
    %5 = vector.broadcast %4 : vector<1x128xf32> to vector<64x128xf32>
    %6 = arith.addf %3, %5 : vector<64x128xf32>
    %cst_5 = arith.constant 0.000000e+00 : f32
    %7 = vector.broadcast %cst_5 : f32 to vector<64x128xf32>
    %8 = arith.maximumf %6, %7 : vector<64x128xf32>
    %9 = arith.truncf %8 : vector<64x128xf32> to vector<64x128xbf16>
    %c0_6 = arith.constant 0 : index
    %c0_7 = arith.constant 0 : index
    %10 = vector.load %arg3[%c0_6, %c0_7] : memref<128x10xbf16, #tpu.memory_space<vmem>>, vector<128x10xbf16>
    %cst_8 = arith.constant dense<0.000000e+00> : vector<64x10xf32>
    %11 = tpu.matmul %9, %10, %cst_8 {dimension_numbers = #tpu.dot_dimension_numbers<[1], [0], [0], [1], [0, 0, 1, 1], [], []>} : vector<64x128xbf16>, vector<128x10xbf16>, vector<64x10xf32> -> vector<64x10xf32>
    %c0_9 = arith.constant 0 : index
    %c0_10 = arith.constant 0 : index
    %12 = vector.load %arg4[%c0_9, %c0_10] : memref<1x10xf32, #tpu.memory_space<vmem>>, vector<1x10xf32>
    %13 = vector.broadcast %12 : vector<1x10xf32> to vector<64x10xf32>
    %14 = arith.addf %11, %13 : vector<64x10xf32>
    %c0_11 = arith.constant 0 : index
    %c0_12 = arith.constant 0 : index
    %15 = vector.load %arg5[%c0_11, %c0_12] : memref<64x10xf32, #tpu.memory_space<vmem>>, vector<64x10xf32>
    tpu.vector_store %arg5[%c0_11, %c0_12], %14 {strides = array<i32>} : memref<64x10xf32, #tpu.memory_space<vmem>>, vector<64x10xf32>,
    return
  }
}

</mosaic_0001>

<bundles_post_ra>
// kernel: tpu_custom_call.1
= control target key start
LH: loop header
LB: loop body
LE: loop exit
PB: predicated region body
PF: predicated region fallthrough
CT: control target
= control target key end

     0   :  { %10 = vsyncpa [#allocation3], 0  ;;  %s1467_s0 = inlined_call_operand.hbm [shape: f32[64,784], index: 0, kind: input, shape index: {}]   ;;  %s1468_s1 = inlined_call_operand.hbm [shape: bf16[784,128], index: 1, kind: input, shape index: {}]   ;;  %s1469_s2 = inlined_call_operand.vmem [shape: f32[1,128], index: 2, kind: input, shape index: {}]   ;;  %s1470_s3 = inlined_call_operand.vmem [shape: bf16[128,10], index: 3, kind: input, shape index: {}]   ;;  %s1471_s4 = inlined_call_operand.vmem [shape: f32[1,10], index: 4, kind: input, shape index: {}]   ;;  %s1472_s5 = inlined_call_operand.vmem [shape: f32[64,10], index: 5, kind: output, shape index: {}]  }
   0x1   :  { %11 = vsyncpa [#allocation5], 0  ;;  %s1325_s18 = smov [#allocation2]  }
   0x2   :  { %s17_s19 = sshll.u32 %s1325_s18, 4  ;;  %s18_s19 = int_to_ptr.vmem [resolvable:$true] %s17_s19 }
   0x3   :  { %s1289_s20 = scalar_lea.vmem %s18_s19, 7168  ;;  %p1294_p1 = scmp.lt.s32.totalorder %s18_s19, %s18_s19 }
   0x4   :  { %p1290_p0 = scmp.ne.s32.totalorder %s18_s19, %s1289_s20  ;;  %p1295_p2 = scmp.lt.s32.totalorder %s1289_s20, %s1289_s20 }
   0x6   :  { %p1296_p3 = por %p1295_p2, %p1294_p1 }
   0x8   :  { %p1297_p4 = pnand %p1296_p3, %p1290_p0 }
   0xa   :  { %1300 = shalt.err (!%p1297_p4)
}
   0xb   :  { %s1326_s21 = smov 896   ;;  %s1327_s22 = smov 56  }
   0xc   :  { %23 = dma.hbm_to_vmem [thread:$0]  %s1467_s0, 7168, %s18_s19, [#allocation3], %s1326_s21, %s1326_s21, %s1327_s22  }
   0xd   :  { %s1328_s25 = smov [#allocation4]  }
   0xe   :  { %s29_s26 = sshll.u32 %s1328_s25, 4  ;;  %s30_s26 = int_to_ptr.vmem [resolvable:$true] %s29_s26 }
   0xf   :  { %s1309_s27 = scalar_lea.vmem %s30_s26, 6272  ;;  %p1314_p6 = scmp.lt.s32.totalorder %s30_s26, %s30_s26 }
  0x10   :  { %p1310_p5 = scmp.ne.s32.totalorder %s30_s26, %s1309_s27  ;;  %p1315_p7 = scmp.lt.s32.totalorder %s1309_s27, %s1309_s27 }
  0x12   :  { %p1316_p8 = por %p1315_p7, %p1314_p6 }
  0x14   :  { %p1317_p9 = pnand %p1316_p8, %p1310_p5 }
  0x16   :  { %1320 = shalt.err (!%p1317_p9)
}
  0x17   :  { %s1329_s28 = smov 64   ;;  %s1330_s29 = smov 4  }
  0x18   :  { %35 = dma.hbm_to_vmem [thread:$0]  %s1468_s1, 6272, %s30_s26, [#allocation5], %s1329_s28, %s1329_s28, %s1330_s29  }
  0x19   :  { %1321 = dma.done.wait [#allocation3], 7168  }
  0x1a   :  { %1322 = vsyncadd [#allocation3], 4294960128 }
  0x1b   :  { %1323 = dma.done.wait [#allocation5], 6272  }
  0x1c   :  { %1324 = vsyncadd [#allocation5], 4294961024  ;;  %v1224_v0 = vld [vmem:[#allocation4 + $0x78] sm:$0xff]   ;;  %v1228_v4 = vld [vmem:[#allocation4 + $0x70] sm:$0xff]   ;;  %vm532_vm0 = vcmask 130048   ;;  %vm953_vm1 = vcmask 80896  }
  0x1d   :  { %v1225_v1 = vld [vmem:[#allocation4 + $0x38] sm:$0xff]   ;;  %1031 = vmatprep.subr.bf16.mxu0 %v1224_v0  ;;  %v1229_v5 = vld [vmem:[#allocation4 + $0x30] sm:$0xff]   ;;  %v1232_v8 = vld [vmem:[#allocation4 + $0x68] sm:$0xff]  }
  0x1e   :  { %v1226_v2 = vld [vmem:[#allocation4 + $0xf8] sm:$0xff]   ;;  %1032 = vmatpush3.bf16.msra.mxu0 %v1225_v1  ;;  %v1230_v6 = vld [vmem:[#allocation4 + $0xf0] sm:$0xff]   ;;  %v1233_v9 = vld [vmem:[#allocation4 + $0x28] sm:$0xff]  }
  0x1f   :  { %v1227_v3 = vld [vmem:[#allocation4 + $0xb8] sm:$0xff]   ;;  %1071 = vmatprep.subr.bf16.mxu1 %v1226_v2  ;;  %1033 = vmatprep.subr.bf16.mxu0 %v1228_v4  ;;  %v1231_v7 = vld [vmem:[#allocation4 + $0xb0] sm:$0xff]   ;;  %v1234_v10 = vld [vmem:[#allocation4 + $0xe8] sm:$0xff]  }
  0x20   :  { %1072 = vmatpush3.bf16.msra.mxu1 %v1227_v3  ;;  %v1235_v11 = vld [vmem:[#allocation4 + $0xa8] sm:$0xff]   ;;  %v1236_v12 = vld [vmem:[#allocation4 + $0x60] sm:$0xff]   ;;  %v1240_v16 = vld [vmem:[#allocation4 + $0x58] sm:$0xff]  }
  0x21   :  { %1073 = vmatprep.subr.bf16.mxu1 %v1230_v6  ;;  %v1237_v13 = vld [vmem:[#allocation4 + $0x20] sm:$0xff]   ;;  %v1241_v17 = vld [vmem:[#allocation4 + $0x18] sm:$0xff]   ;;  %v1244_v20 = vld [vmem:[#allocation4 + $0x50] sm:$0xff]  }
  0x22   :  { %1034 = vmatpush3.bf16.msra.mxu0 %v1229_v5  ;;  %v1238_v14 = vld [vmem:[#allocation4 + $0xe0] sm:$0xff]   ;;  %v1242_v18 = vld [vmem:[#allocation4 + $0xd8] sm:$0xff]   ;;  %v1245_v21 = vld [vmem:[#allocation4 + $0x10] sm:$0xff]  }
  0x23   :  { %1035 = vmatprep.subr.bf16.mxu0 %v1232_v8  ;;  %v1239_v15 = vld [vmem:[#allocation4 + $0xa0] sm:$0xff]   ;;  %v1243_v19 = vld [vmem:[#allocation4 + $0x98] sm:$0xff]   ;;  %v1246_v22 = vld [vmem:[#allocation4 + $0xd0] sm:$0xff]  }
  0x24   :  { %1074 = vmatpush3.bf16.msra.mxu1 %v1231_v7  ;;  %v1247_v23 = vld [vmem:[#allocation4 + $0x90] sm:$0xff]   ;;  %v1248_v24 = vld [vmem:[#allocation4 + $0x48] sm:$0xff]   ;;  %v1252_v28 = vld [vmem:[#allocation4 + $0x40] sm:$0xff]  }
  0x25   :  { %1075 = vmatprep.subr.bf16.mxu1 %v1234_v10  ;;  %v1249_v25 = vld [vmem:[#allocation4 + $0x8] sm:$0xff]   ;;  %v1253_v29 = vld [vmem:[#allocation4] sm:$0xff]   ;;  %v56_v36 = vld [vmem:[#allocation2 + $0x38] sm:$0xff] }
  0x26   :  { %1036 = vmatpush3.bf16.msra.mxu0 %v1233_v9  ;;  %v1250_v26 = vld [vmem:[#allocation4 + $0xc8] sm:$0xff]   ;;  %v1254_v30 = vld [vmem:[#allocation4 + $0xc0] sm:$0xff]   ;;  %v1256_v38 = vld [vmem:[#allocation4 + $0x178] sm:$0xff]  }
  0x27   :  { %1037 = vmatprep.subr.bf16.mxu0 %v1236_v12  ;;  %v1251_v27 = vld [vmem:[#allocation4 + $0x88] sm:$0xff]   ;;  %v57_v32 = vld [vmem:[#allocation2 + $0x40] sm:$0xff]  ;;  %v52_v39 = vld [vmem:[#allocation2 + $0x18] sm:$0xff] }
  0x28   :  { %1076 = vmatpush3.bf16.msra.mxu1 %v1235_v11  ;;  %v50_v31 = vld [vmem:[#allocation2 + $0x8] sm:$0xff]  ;;  %v1255_v34 = vld [vmem:[#allocation4 + $0x80] sm:$0xff]   ;;  %v59_v40 = vld [vmem:[#allocation2 + $0x50] sm:$0xff] }
  0x29   :  { %1077 = vmatprep.subr.bf16.mxu1 %v1238_v14  ;;  %v106_v33 = vpack.c.bf16 %v57_v32, %v50_v31  ;;  %v49_v35 = vld [vmem:[#allocation2] sm:$0xff]  ;;  %v108_v41 = vpack.c.bf16 %v59_v40, %v52_v39  ;;  %v1257_v42 = vld [vmem:[#allocation4 + $0x138] sm:$0xff]   ;;  %v51_v43 = vld [vmem:[#allocation2 + $0x10] sm:$0xff] }
  0x2a   :  { %1038 = vmatpush3.bf16.msra.mxu0 %v1237_v13  ;;  %v105_v37 = vpack.c.bf16 %v56_v36, %v49_v35  ;;  %v58_v44 = vld [vmem:[#allocation2 + $0x48] sm:$0xff]  ;;  %v1258_v46 = vld [vmem:[#allocation4 + $0x170] sm:$0xff]   ;;  %v64_v48 = vld [vmem:[#allocation2 + $0x78] sm:$0xff] }
  0x2b   :  { %1039 = vmatprep.subr.bf16.mxu0 %v1240_v16  ;;  %577 = vmatprep.mubr.bf16.mxu0 %v106_v33  ;;  %v107_v45 = vpack.c.bf16 %v58_v44, %v51_v43  ;;  %v1259_v47 = vld [vmem:[#allocation4 + $0x130] sm:$0xff]   ;;  %v70_v51 = vld [vmem:[#allocation2 + $0xa8] sm:$0xff]  ;;  %v73_v56 = vld [vmem:[#allocation2 + $0xc0] sm:$0xff] }
  0x2c   :  { %1078 = vmatpush3.bf16.msra.mxu1 %v1239_v15  ;;  %642 = vmatprep.mubr.bf16.mxu1 %v108_v41  ;;  %v71_v49 = vld [vmem:[#allocation2 + $0xb0] sm:$0xff]  ;;  %v1260_v54 = vld [vmem:[#allocation4 + $0x168] sm:$0xff]   ;;  %v65_v59 = vld [vmem:[#allocation2 + $0x80] sm:$0xff] }
  0x2d   :  { %1079 = vmatprep.subr.bf16.mxu1 %v1242_v18  ;;  %v63_v50 = vld [vmem:[#allocation2 + $0x70] sm:$0xff]  ;;  %v113_v52 = vpack.c.bf16 %v71_v49, %v64_v48  ;;  %v66_v55 = vld [vmem:[#allocation2 + $0x88] sm:$0xff]  ;;  %v72_v60 = vld [vmem:[#allocation2 + $0xb8] sm:$0xff] }
  0x2e   :  { %1040 = vmatpush3.bf16.msra.mxu0 %v1241_v17  ;;  %v112_v53 = vpack.c.bf16 %v70_v51, %v63_v50  ;;  %v115_v57 = vpack.c.bf16 %v73_v56, %v66_v55  ;;  %v1261_v58 = vld [vmem:[#allocation4 + $0x128] sm:$0xff]   ;;  %v114_v61 = vpack.c.bf16 %v72_v60, %v65_v59  ;;  %v1262_v62 = vld [vmem:[#allocation4 + $0x160] sm:$0xff]   ;;  %v84_v4 = vld [vmem:[#allocation2 + $0x118] sm:$0xff] }
  0x2f   :  { %1041 = vmatprep.subr.bf16.mxu0 %v1244_v20  ;;  %v1263_v63 = vld [vmem:[#allocation4 + $0x120] sm:$0xff]   ;;  %v78_v0 = vld [vmem:[#allocation2 + $0xe8] sm:$0xff]  ;;  %v1264_v5 = vld [vmem:[#allocation4 + $0x158] sm:$0xff]  }
  0x30   :  { %1080 = vmatpush3.bf16.msra.mxu1 %v1243_v19  ;;  %v85_v1 = vld [vmem:[#allocation2 + $0x120] sm:$0xff]  ;;  %v80_v6 = vld [vmem:[#allocation2 + $0xf8] sm:$0xff]  ;;  %v87_v8 = vld [vmem:[#allocation2 + $0x130] sm:$0xff] }
  0x31   :  { %1081 = vmatprep.subr.bf16.mxu1 %v1246_v22  ;;  %v120_v2 = vpack.c.bf16 %v85_v1, %v78_v0  ;;  %v77_v3 = vld [vmem:[#allocation2 + $0xe0] sm:$0xff]  ;;  %v122_v9 = vpack.c.bf16 %v87_v8, %v80_v6  ;;  %v1265_v10 = vld [vmem:[#allocation4 + $0x118] sm:$0xff]   ;;  %v79_v11 = vld [vmem:[#allocation2 + $0xf0] sm:$0xff] }
  0x32   :  { %1042 = vmatpush3.bf16.msra.mxu0 %v1245_v21  ;;  %v119_v7 = vpack.c.bf16 %v84_v4, %v77_v3  ;;  %v86_v12 = vld [vmem:[#allocation2 + $0x128] sm:$0xff]  ;;  %v1266_v13 = vld [vmem:[#allocation4 + $0x180] sm:$0xff]   ;;  %v1267_v15 = vld [vmem:[#allocation4 + $0x150] sm:$0xff]  }
  0x33   :  { %1043 = vmatprep.subr.bf16.mxu0 %v1248_v24  ;;  %v121_v14 = vpack.c.bf16 %v86_v12, %v79_v11  ;;  %v1268_v16 = vld [vmem:[#allocation4 + $0x110] sm:$0xff]   ;;  %v92_v17 = vld [vmem:[#allocation2 + $0x158] sm:$0xff]  ;;  %v98_v21 = vld [vmem:[#allocation2 + $0x188] sm:$0xff] }
  0x34   :  { %1082 = vmatpush3.bf16.msra.mxu1 %v1247_v23  ;;  %v99_v18 = vld [vmem:[#allocation2 + $0x190] sm:$0xff]  ;;  %v1269_v22 = vld [vmem:[#allocation4 + $0x148] sm:$0xff]   ;;  %v101_v24 = vld [vmem:[#allocation2 + $0x1a0] sm:$0xff] }
  0x35   :  { %1083 = vmatprep.subr.bf16.mxu1 %v1250_v26  ;;  %v91_v19 = vld [vmem:[#allocation2 + $0x150] sm:$0xff]  ;;  %v127_v20 = vpack.c.bf16 %v99_v18, %v92_v17  ;;  %v94_v23 = vld [vmem:[#allocation2 + $0x168] sm:$0xff]  ;;  %v1272_v33 = vld [vmem:[#allocation4 + $0x100] sm:$0xff]  }
  0x36   :  { %1044 = vmatpush3.bf16.msra.mxu0 %v1249_v25  ;;  %v126_v25 = vpack.c.bf16 %v98_v21, %v91_v19  ;;  %v129_v26 = vpack.c.bf16 %v101_v24, %v94_v23  ;;  %v54_v32 = vld [vmem:[#allocation2 + $0x28] sm:$0xff]  ;;  %v53_v35 = vld [vmem:[#allocation2 + $0x20] sm:$0xff]  ;;  %v68_v41 = vld [vmem:[#allocation2 + $0x98] sm:$0xff] }
  0x37   :  { %1045 = vmatprep.subr.bf16.mxu0 %v1252_v28  ;;  %v93_v28 = vld [vmem:[#allocation2 + $0x160] sm:$0xff]  ;;  %v62_v39 = vld [vmem:[#allocation2 + $0x68] sm:$0xff]  ;;  %v67_v50 = vld [vmem:[#allocation2 + $0x90] sm:$0xff] }
  0x38   :  { %1084 = vmatpush3.bf16.msra.mxu1 %v1251_v27  ;;  %v1270_v27 = vld [vmem:[#allocation4 + $0x108] sm:$0xff]   ;;  %v69_v44 = vld [vmem:[#allocation2 + $0xa0] sm:$0xff]  ;;  %v104_v56 = vld [vmem:[#allocation2 + $0x1b8] sm:$0xff] }
  0x39   :  { %1085 = vmatprep.subr.bf16.mxu1 %v1254_v30  ;;  %v1271_v30 = vld [vmem:[#allocation4 + $0x140] sm:$0xff]   ;;  %v90_v48 = vld [vmem:[#allocation2 + $0x148] sm:$0xff]  ;;  %v1274_v6 = vld [vmem:[%s1470_s3 + $0x30] sm:$0xff]  }
  0x3a   :  { %1046 = vmatpush3.bf16.msra.mxu0 %v1253_v29  ;;  %v100_v29 = vld [vmem:[#allocation2 + $0x198] sm:$0xff]  ;;  %v74_v51 = vld [vmem:[#allocation2 + $0xc8] sm:$0xff]  ;;  %v97_v55 = vld [vmem:[#allocation2 + $0x180] sm:$0xff] }
  0x3b   :  { %1111 = vmatprep.subr.bf16.mxu0 %v1256_v38  ;;  %v128_v31 = vpack.c.bf16 %v100_v29, %v93_v28  ;;  %v55_v38 = vld [vmem:[#allocation2 + $0x30] sm:$0xff]  ;;  %v132_v59 = vpack.c.bf16 %v104_v56, %v97_v55  ;;  %v81_v60 = vld [vmem:[#allocation2 + $0x100] sm:$0xff]  ;;  %v102_v3 = vld [vmem:[#allocation2 + $0x1a8] sm:$0xff] }
  0x3c   :  { %1086 = vmatpush3.bf16.msra.mxu1 %v1255_v34  ;;  %v61_v34 = vld [vmem:[#allocation2 + $0x60] sm:$0xff]  ;;  %v111_v40 = vpack.c.bf16 %v62_v39, %v55_v38  ;;  %v1279_v11 = vld [vmem:[%s1470_s3 + $0x8] sm:$0xff]  }
  0x3d   :  { %578 = vmatmul.mubr.bf16.vlgmr.msra.gmra.mxu0 %v105_v37  ;;  %1168 = vmatprep.subr.bf16.mxu1 %v1266_v13  ;;  %v110_v36 = vpack.c.bf16 %v61_v34, %v54_v32  ;;  %v60_v37 = vld [vmem:[#allocation2 + $0x58] sm:$0xff]  ;;  %v1276_v8 = vld [vmem:[%s1470_s3 + $0x20] sm:$0xff]  }
  0x3e   :  { %1112 = vmatpush3.bf16.msra.mxu0 %v1257_v42  ;;  %585 = vmatprep.mubr.bf16.mxu0 %v113_v52  ;;  %v75_v42 = vld [vmem:[#allocation2 + $0xd0] sm:$0xff]  ;;  %v109_v43 = vpack.c.bf16 %v60_v37, %v53_v35  ;;  %v82_v52 = vld [vmem:[#allocation2 + $0x108] sm:$0xff]  ;;  %v1280_v12 = vld [vmem:[%s1470_s3] sm:$0xff]  }
  0x3f   :  { %643 = vmatmul.mubr.bf16.vlgmr.msra.gmra.mxu1 %v107_v45  ;;  %1113 = vmatprep.subr.bf16.mxu0 %v1258_v46  ;;  %v76_v45 = vld [vmem:[#allocation2 + $0xd8] sm:$0xff]  ;;  %v117_v46 = vpack.c.bf16 %v75_v42, %v68_v41  ;;  %v1404_v41 = vld [vmem:[%s1469_s2] ss:$0 sm:$0xff] }
  0x40   :  { %650 = vmatprep.mubr.bf16.mxu1 %v115_v57  ;;  %1169 = vmatpush3.bf16.msra.mxu1 %v1266_v13  ;;  %v118_v49 = vpack.c.bf16 %v76_v45, %v69_v44  ;;  %v116_v57 = vpack.c.bf16 %v74_v51, %v67_v50 }
  0x42   :  { %1114 = vmatpush3.bf16.msra.mxu0 %v1259_v47  ;;  %v83_v47 = vld [vmem:[#allocation2 + $0x110] sm:$0xff] }
  0x43   :  { %1115 = vmatprep.subr.bf16.mxu0 %v1260_v54  ;;  %v125_v54 = vpack.c.bf16 %v90_v48, %v83_v47 }
  0x45   :  { %586 = vmatmul.mubr.bf16.gmra.mxu0 %v112_v53  ;;  %v89_v53 = vld [vmem:[#allocation2 + $0x140] sm:$0xff] }
  0x46   :  { %1116 = vmatpush3.bf16.msra.mxu0 %v1261_v58  ;;  %593 = vmatprep.mubr.bf16.mxu0 %v120_v2  ;;  %v124_v58 = vpack.c.bf16 %v89_v53, %v82_v52  ;;  %v95_v2 = vld [vmem:[#allocation2 + $0x170] sm:$0xff] }
  0x47   :  { %1117 = vmatprep.subr.bf16.mxu0 %v1262_v62  ;;  %651 = vmatmul.mubr.bf16.gmra.mxu1 %v114_v61  ;;  %v88_v61 = vld [vmem:[#allocation2 + $0x138] sm:$0xff]  ;;  %v130_v4 = vpack.c.bf16 %v102_v3, %v95_v2 }
  0x48   :  { %658 = vmatprep.mubr.bf16.mxu1 %v122_v9  ;;  %v96_v62 = vld [vmem:[#allocation2 + $0x178] sm:$0xff]  ;;  %v123_v0 = vpack.c.bf16 %v88_v61, %v81_v60 }
  0x49   :  { %v1277_v9 = vld [vmem:[%s1470_s3 + $0x18] sm:$0xff]  }
  0x4a   :  { %1118 = vmatpush3.bf16.msra.mxu0 %v1263_v63  ;;  %v103_v63 = vld [vmem:[#allocation2 + $0x1b0] sm:$0xff] }
  0x4b   :  { %1119 = vmatprep.subr.bf16.mxu0 %v1264_v5  ;;  %v131_v1 = vpack.c.bf16 %v103_v63, %v96_v62  ;;  %v1273_v5 = vld [vmem:[%s1470_s3 + $0x38] sm:$0xff]  }
  0x4c   :  { %1202 = vmatprep.subr.bf16.mxu1 %v1273_v5 }
  0x4d   :  { %594 = vmatmul.mubr.bf16.gmra.mxu0 %v119_v7  ;;  %v1275_v7 = vld [vmem:[%s1470_s3 + $0x28] sm:$0xff]  }
  0x4e   :  { %1120 = vmatpush3.bf16.msra.mxu0 %v1265_v10  ;;  %601 = vmatprep.mubr.bf16.mxu0 %v127_v20  ;;  %v1278_v10 = vld [vmem:[%s1470_s3 + $0x10] sm:$0xff]  }
  0x4f   :  { %1121 = vmatprep.subr.bf16.mxu0 %v1267_v15  ;;  %659 = vmatmul.mubr.bf16.gmra.mxu1 %v121_v14 }
  0x50   :  { %666 = vmatprep.mubr.bf16.mxu1 %v129_v26 }
  0x52   :  { %1122 = vmatpush3.bf16.msra.mxu0 %v1268_v16 }
  0x53   :  { %1123 = vmatprep.subr.bf16.mxu0 %v1269_v22 }
  0x55   :  { %602 = vmatmul.mubr.bf16.gmra.mxu0 %v126_v25 }
  0x56   :  { %1124 = vmatpush3.bf16.msra.mxu0 %v1270_v27  ;;  %707 = vmatprep.mubr.bf16.mxu0 %v110_v36 }
  0x57   :  { %1125 = vmatprep.subr.bf16.mxu0 %v1271_v30  ;;  %667 = vmatmul.mubr.bf16.gmra.mxu1 %v128_v31 }
  0x58   :  { %1170 = vmatprep.mubr.msk.bf16.mxu1 %vm532_vm0, %v111_v40 }
  0x5a   :  { %1126 = vmatpush3.bf16.msra.mxu0 %v1272_v33 }
  0x5b   :  { %1178 = vmatprep.subr.bf16.mxu0 %v1273_v5 }
  0x5d   :  { %708 = vmatmul.mubr.bf16.vlgmr.msra.gmra.mxu0 %v109_v43 }
  0x5e   :  { %715 = vmatprep.mubr.bf16.mxu0 %v117_v46  ;;  %1179 = vmatpush3.bf16.msra.mxu0 %v1273_v5 }
  0x5f   :  { %1171 = vmatmul.mubr.msk.bf16.vlgmr.msra.gmra.mxu1 %vm532_vm0, %v118_v49  ;;  %1180 = vmatprep.subr.bf16.mxu0 %v1274_v6 }
  0x60   :  { %1174 = vmatprep.mubr.msk.bf16.mxu1 %vm532_vm0, %v125_v54  ;;  %1210 = vmatpush3.bf16.msra.mxu1 %v1273_v5 }
  0x61   :  { %1203 = vmatprep.subr.bf16.mxu1 %v1274_v6 }
  0x62   :  { %1181 = vmatpush3.bf16.msra.mxu0 %v1274_v6 }
  0x63   :  { %1182 = vmatprep.subr.bf16.mxu0 %v1275_v7 }
  0x64   :  { %1211 = vmatpush3.bf16.msra.mxu1 %v1274_v6 }
  0x65   :  { %716 = vmatmul.mubr.bf16.gmra.mxu0 %v116_v57  ;;  %1204 = vmatprep.subr.bf16.mxu1 %v1275_v7 }
  0x66   :  { %723 = vmatprep.mubr.bf16.mxu0 %v124_v58  ;;  %1183 = vmatpush3.bf16.msra.mxu0 %v1275_v7 }
  0x67   :  { %1175 = vmatmul.mubr.msk.bf16.gmra.mxu1 %vm532_vm0, %v132_v59  ;;  %1184 = vmatprep.subr.bf16.mxu0 %v1276_v8 }
  0x68   :  { %1212 = vmatpush3.bf16.msra.mxu1 %v1275_v7 }
  0x69   :  { %1205 = vmatprep.subr.bf16.mxu1 %v1276_v8 }
  0x6a   :  { %1185 = vmatpush3.bf16.msra.mxu0 %v1276_v8 }
  0x6b   :  { %1186 = vmatprep.subr.bf16.mxu0 %v1277_v9 }
  0x6c   :  { %1213 = vmatpush3.bf16.msra.mxu1 %v1276_v8 }
  0x6d   :  { %724 = vmatmul.mubr.bf16.gmra.mxu0 %v123_v0  ;;  %1206 = vmatprep.subr.bf16.mxu1 %v1277_v9 }
  0x6e   :  { %731 = vmatprep.mubr.bf16.mxu0 %v131_v1  ;;  %1187 = vmatpush3.bf16.msra.mxu0 %v1277_v9 }
  0x6f   :  { %1188 = vmatprep.subr.bf16.mxu0 %v1278_v10 }
  0x70   :  { %1214 = vmatpush3.bf16.msra.mxu1 %v1277_v9 }
  0x71   :  { %1207 = vmatprep.subr.bf16.mxu1 %v1278_v10 }
  0x72   :  { %1189 = vmatpush3.bf16.msra.mxu0 %v1278_v10 }
  0x73   :  { %1190 = vmatprep.subr.bf16.mxu0 %v1279_v11 }
  0x74   :  { %1215 = vmatpush3.bf16.msra.mxu1 %v1278_v10 }
  0x75   :  { %732 = vmatmul.mubr.bf16.gmra.mxu0 %v130_v4  ;;  %1208 = vmatprep.subr.bf16.mxu1 %v1279_v11 }
  0x76   :  { %1191 = vmatpush3.bf16.msra.mxu0 %v1279_v11 }
  0x77   :  { %1192 = vmatprep.subr.bf16.mxu0 %v1280_v12 }
  0x78   :  { %1216 = vmatpush3.bf16.msra.mxu1 %v1279_v11 }
  0x79   :  { %1209 = vmatprep.subr.bf16.mxu1 %v1280_v12 }
  0x7a   :  { %1193 = vmatpush3.bf16.msra.mxu0 %v1280_v12 }
  0x7c   :  { %1217 = vmatpush3.bf16.msra.mxu1 %v1280_v12 }
  0xfd   :  { %v1047_v13 = vpop.f32.mrf.mxu0 }
  0xff   :  { %v1048_v14 = vpop.f32.mrf.mxu0  ;;  %v1087_v15 = vpop.f32.mrf.mxu1 }
 0x100   :  { %v1049_v39 = vadd.f32 %v1048_v14, %v1047_v13 }
 0x101   :  { %v1050_v16 = vpop.f32.mrf.mxu0  ;;  %v1088_v17 = vpop.f32.mrf.mxu1 }
 0x102   :  { %v580_v45 = vadd.f32 %v1049_v39, %v1404_v41  ;;  %v1089_v46 = vadd.f32 %v1088_v17, %v1087_v15 }
 0x103   :  { %v1051_v18 = vpop.f32.mrf.mxu0  ;;  %v1090_v19 = vpop.f32.mrf.mxu1 }
 0x104   :  { %v1052_v47 = vadd.f32 %v1051_v18, %v1050_v16  ;;  %v645_v53 = vadd.f32 %v1089_v46, %v580_v45 }
 0x105   :  { %v1053_v20 = vpop.f32.mrf.mxu0  ;;  %v1091_v21 = vpop.f32.mrf.mxu1 }
 0x106   :  { %v583_v54 = vadd.f32 %v1052_v47, %v1404_v41  ;;  %v1092_v55 = vadd.f32 %v1091_v21, %v1090_v19 }
 0x107   :  { %v1054_v22 = vpop.f32.mrf.mxu0  ;;  %v1093_v23 = vpop.f32.mrf.mxu1 }
 0x108   :  { %v1055_v51 = vadd.f32 %v1054_v22, %v1053_v20  ;;  %v648_v0 = vadd.f32 %v1092_v55, %v583_v54 }
 0x109   :  { %v1056_v24 = vpop.f32.mrf.mxu0  ;;  %v1094_v25 = vpop.f32.mrf.mxu1 }
 0x10a   :  { %v588_v61 = vadd.f32 %v1055_v51, %v1404_v41  ;;  %v1095_v62 = vadd.f32 %v1094_v25, %v1093_v23 }
 0x10b   :  { %v1057_v26 = vpop.f32.mrf.mxu0  ;;  %v1096_v27 = vpop.f32.mrf.mxu1 }
 0x10c   :  { %v1058_v1 = vadd.f32 %v1057_v26, %v1056_v24  ;;  %v653_v8 = vadd.f32 %v1095_v62, %v588_v61 }
 0x10d   :  { %v1059_v28 = vpop.f32.mrf.mxu0  ;;  %v1097_v29 = vpop.f32.mrf.mxu1 }
 0x10e   :  { %v591_v11 = vadd.f32 %v1058_v1, %v1404_v41  ;;  %v1098_v12 = vadd.f32 %v1097_v29, %v1096_v27 }
 0x10f   :  { %v1060_v30 = vpop.f32.mrf.mxu0  ;;  %v1099_v31 = vpop.f32.mrf.mxu1 }
 0x110   :  { %v1061_v9 = vadd.f32 %v1060_v30, %v1059_v28  ;;  %v656_v23 = vadd.f32 %v1098_v12, %v591_v11 }
 0x111   :  { %v1062_v32 = vpop.f32.mrf.mxu0  ;;  %v1100_v33 = vpop.f32.mrf.mxu1 }
 0x112   :  { %v596_v20 = vadd.f32 %v1061_v9, %v1404_v41  ;;  %v1101_v21 = vadd.f32 %v1100_v33, %v1099_v31 }
 0x113   :  { %v1063_v34 = vpop.f32.mrf.mxu0  ;;  %v1395_v35 = vpop.f32.mrf.mxu1 }
 0x114   :  { %v1064_v24 = vadd.f32 %v1063_v34, %v1062_v32  ;;  %v661_v27 = vadd.f32 %v1101_v21, %v596_v20 }
 0x115   :  { %v1065_v36 = vpop.f32.mrf.mxu0  ;;  %v1397_v37 = vpop.f32.mrf.mxu1 }
 0x116   :  { %v599_v47 = vadd.f32 %v1064_v24, %v1404_v41 }
 0x117   :  { %v1066_v38 = vpop.f32.mrf.mxu0  ;;  %v1399_v40 = vpop.f32.mrf.mxu1 }
 0x118   :  { %v1067_v29 = vadd.f32 %v1066_v38, %v1065_v36 }
 0x119   :  { %v1406_v42 = vpop.f32.mrf.mxu0  ;;  %v1408_v43 = vpop.f32.mrf.mxu1 }
 0x11a   :  { %v604_v54 = vadd.f32 %v1067_v29, %v1404_v41  ;;  %v1107_v55 = vadd.f32 %v1408_v43, %v1399_v40 }
 0x11b   :  { %v1410_v44 = vpop.f32.mrf.mxu0  ;;  %v1413_v48 = vpop.f32.mrf.mxu1 }
 0x11c   :  { %v1070_v38 = vadd.f32 %v1410_v44, %v1406_v42  ;;  %v669_v61 = vadd.f32 %v1107_v55, %v604_v54 }
 0x11d   :  { %v1127_v49 = vpop.f32.mrf.mxu0  ;;  %v1415_v50 = vpop.f32.mrf.mxu1 }
 0x11f   :  { %v1128_v52 = vpop.f32.mrf.mxu0  ;;  %v1172_v57 = vpop.f32.mrf.mxu1 }
 0x120   :  { %v1129_v56 = vadd.f32 %v1128_v52, %v1127_v49  ;;  %v1104_v49 = vadd.f32 %v1397_v37, %v1395_v35 }
 0x121   :  { %v1130_v58 = vpop.f32.mrf.mxu0  ;;  %v774_v60 = vpop.f32.mrf.mxu1 }
 0x122   :  { %v710_v59 = vadd.f32 %v1129_v56, %v645_v53  ;;  %v664_v36 = vadd.f32 %v1104_v49, %v599_v47 }
 0x123   :  { %v1131_v63 = vpop.f32.mrf.mxu0  ;;  %v1173_v3 = vpop.f32.mrf.mxu1 }
 0x124   :  { %v1132_v2 = vadd.f32 %v1131_v63, %v1130_v58  ;;  %v775_v5 = vadd.f32 %v774_v60, %v710_v59  ;;  %v607_v63 = vadd.f32 %v1070_v38, %v1404_v41 }
 0x125   :  { %v1133_v4 = vpop.f32.mrf.mxu0  ;;  %v777_v7 = vpop.f32.mrf.mxu1 }
 0x126   :  { %v713_v6 = vadd.f32 %v1132_v2, %v648_v0  ;;  %v805_v17 = vmax.f32 %v775_v5, 0.0  ;;  %v1110_v0 = vadd.f32 %v1415_v50, %v1413_v48  ;;  %v1022_v48 = vld [vmem:[%s1471_s4] ss:$0 sm:$0xff] }
 0x127   :  { %v1134_v10 = vpop.f32.mrf.mxu0  ;;  %v1176_v16 = vpop.f32.mrf.mxu1 }
 0x128   :  { %v1135_v13 = vadd.f32 %v1134_v10, %v1133_v4  ;;  %v778_v14 = vadd.f32 %v777_v7, %v713_v6  ;;  %v672_v4 = vadd.f32 %v1110_v0, %v607_v63 }
 0x129   :  { %v1136_v15 = vpop.f32.mrf.mxu0  ;;  %v790_v30 = vpop.f32.mrf.mxu1 }
 0x12a   :  { %v718_v18 = vadd.f32 %v1135_v13, %v653_v8  ;;  %v806_v19 = vmax.f32 %v778_v14, 0.0 }
 0x12b   :  { %v1137_v22 = vpop.f32.mrf.mxu0  ;;  %v1177_v52 = vpop.f32.mrf.mxu1 }
 0x12c   :  { %v813_v25 = vpack.c.bf16 %v806_v19, %v805_v17  ;;  %v1138_v26 = vadd.f32 %v1137_v22, %v1136_v15  ;;  %v783_v39 = vadd.f32 %v1172_v57, %v718_v18 }
 0x12d   :  { %v1139_v28 = vpop.f32.mrf.mxu0  ;;  %v793_v37 = vpop.f32.mrf.mxu1 }
 0x12e   :  { %v721_v45 = vadd.f32 %v1138_v26, %v656_v23  ;;  %1194 = vmatprep.mubr.bf16.mxu0 %v813_v25  ;;  %v807_v32 = vmax.f32 %v783_v39, 0.0 }
 0x12f   :  { %v1140_v46 = vpop.f32.mrf.mxu0 }
 0x130   :  { %v786_v51 = vadd.f32 %v1173_v3, %v721_v45  ;;  %v1141_v31 = vadd.f32 %v1140_v46, %v1139_v28 }
 0x131   :  { %v1142_v33 = vpop.f32.mrf.mxu0 }
 0x132   :  { %v808_v34 = vmax.f32 %v786_v51, 0.0  ;;  %v726_v53 = vadd.f32 %v1141_v31, %v661_v27 }
 0x133   :  { %v1143_v56 = vpop.f32.mrf.mxu0 }
 0x134   :  { %v814_v57 = vpack.c.bf16 %v808_v34, %v807_v32  ;;  %v1144_v58 = vadd.f32 %v1143_v56, %v1142_v33  ;;  %v791_v59 = vadd.f32 %v790_v30, %v726_v53 }
 0x135   :  { %v1145_v35 = vpop.f32.mrf.mxu0 }
 0x136   :  { %1195 = vmatmul.mubr.bf16.vlgmr.msra.gmra.mxu0 %v814_v57  ;;  %v729_v60 = vadd.f32 %v1144_v58, %v664_v36  ;;  %v809_v2 = vmax.f32 %v791_v59, 0.0 }
 0x137   :  { %v1146_v62 = vpop.f32.mrf.mxu0 }
 0x138   :  { %v1147_v40 = vadd.f32 %v1146_v62, %v1145_v35  ;;  %v794_v43 = vadd.f32 %v793_v37, %v729_v60 }
 0x139   :  { %v1148_v1 = vpop.f32.mrf.mxu0 }
 0x13a   :  { %v734_v3 = vadd.f32 %v1147_v40, %v669_v61  ;;  %v810_v42 = vmax.f32 %v794_v43, 0.0 }
 0x13b   :  { %v1149_v44 = vpop.f32.mrf.mxu0 }
 0x13c   :  { %v815_v5 = vpack.c.bf16 %v810_v42, %v809_v2  ;;  %v1150_v6 = vadd.f32 %v1149_v44, %v1148_v1  ;;  %v799_v7 = vadd.f32 %v1176_v16, %v734_v3 }
 0x13e   :  { %v737_v8 = vadd.f32 %v1150_v6, %v672_v4  ;;  %1198 = vmatprep.mubr.bf16.mxu1 %v815_v5  ;;  %v811_v10 = vmax.f32 %v799_v7, 0.0 }
 0x140   :  { %v802_v9 = vadd.f32 %v1177_v52, %v737_v8 }
 0x142   :  { %v812_v11 = vmax.f32 %v802_v9, 0.0 }
 0x144   :  { %v816_v41 = vpack.c.bf16 %v812_v11, %v811_v10 }
 0x146   :  { %1199 = vmatmul.mubr.bf16.vlgmr.msra.gmra.mxu1 %v816_v41 }
 0x1f6   :  { %v1196_v50 = vpop.f32.mrf.mxu0 }
 0x1f7   :  { %v931_v12 = vadd.f32 %v1196_v50, %v1022_v48 }
 0x1f8   :  { %v922_v13 = vpop.f32.mrf.mxu0 }
 0x1f9   :  { %956 = vst.msk [vmem:[%s1472_s5 + $0x10] sm:$0xff] %vm953_vm1, %v931_v12  ;;  %v923_v14 = vadd.f32 %v1022_v48, %v922_v13 }
 0x1fa   :  { %v1197_v15 = vpop.f32.mrf.mxu0 }
 0x1fb   :  { %954 = vst.msk [vmem:[%s1472_s5] sm:$0xff] %vm953_vm1, %v923_v14  ;;  %v934_v16 = vadd.f32 %v1197_v15, %v1022_v48 }
 0x1fc   :  { %v925_v17 = vpop.f32.mrf.mxu0 }
 0x1fd   :  { %957 = vst.msk [vmem:[%s1472_s5 + $0x18] sm:$0xff] %vm953_vm1, %v934_v16  ;;  %v926_v18 = vadd.f32 %v1022_v48, %v925_v17 }
 0x1ff   :  { %955 = vst.msk [vmem:[%s1472_s5 + $0x8] sm:$0xff] %vm953_vm1, %v926_v18 }
 0x206   :  { %v1200_v19 = vpop.f32.mrf.mxu1 }
 0x207   :  { %v947_v20 = vadd.f32 %v1200_v19, %v1022_v48 }
 0x208   :  { %v938_v21 = vpop.f32.mrf.mxu1 }
 0x209   :  { %960 = vst.msk [vmem:[%s1472_s5 + $0x30] sm:$0xff] %vm953_vm1, %v947_v20  ;;  %v939_v22 = vadd.f32 %v1022_v48, %v938_v21 }
 0x20a   :  { %v1201_v23 = vpop.f32.mrf.mxu1 }
 0x20b   :  { %958 = vst.msk [vmem:[%s1472_s5 + $0x20] sm:$0xff] %vm953_vm1, %v939_v22  ;;  %v950_v24 = vadd.f32 %v1201_v23, %v1022_v48 }
 0x20c   :  { %v941_v25 = vpop.f32.mrf.mxu1 }
 0x20d   :  { %961 = vst.msk [vmem:[%s1472_s5 + $0x38] sm:$0xff] %vm953_vm1, %v950_v24  ;;  %v942_v26 = vadd.f32 %v1022_v48, %v941_v25 }
 0x20f   :  { %959 = vst.msk [vmem:[%s1472_s5 + $0x28] sm:$0xff] %vm953_vm1, %v942_v26 }
 0x210   :  { %966 = vsyncpa [#allocation3], 1 }
 0x211   :  { %967 = vsyncpa [#allocation5], 1 }

</bundles_post_ra>
